<compile_context>
chip_gen: v6e
topology: v6e:2x2x1
jax: 0.10.0
libtpu: 0.0.40
codegen_flags: <defaults>
</compile_context>

<pallas_src>
import jax
import jax.numpy as jnp
from jax.experimental import pallas as pl
from jax.experimental.pallas import tpu as pltpu

H1, H2, H3, H4 = 128, 64, 16, 1


def _tail(h1, w2_ref, b2_ref, w3_ref, b3_ref, w4t_ref, b4_ref, o_ref):
    """fc2/fc3/fc4 + activations given the (tb, 128) fc1 pre-activation."""
    h = jnp.maximum(h1, 0.0)                                        # (tb, 128)
    h = jnp.dot(h.astype(w2_ref.dtype), w2_ref[...],
                preferred_element_type=jnp.float32)
    h = jnp.maximum(h + b2_ref[...], 0.0)                           # (tb, 64)
    h = jnp.dot(h.astype(w3_ref.dtype), w3_ref[...],
                preferred_element_type=jnp.float32)
    h = jnp.maximum(h + b3_ref[...], 0.0)                           # (tb, 16)
    # fc4 in lane-major form: (1,16) . (tb,16)^T -> (1, tb); final store is
    # lane-dense (no 1-of-128-lane masked stores, no sublane->lane relayout).
    z = jax.lax.dot_general(
        w4t_ref[...], h.astype(w4t_ref.dtype),
        dimension_numbers=(((1,), (1,)), ((), ())),
        preferred_element_type=jnp.float32)                         # (1, tb)
    z = z + b4_ref[0, 0]
    o_ref[...] = jax.nn.sigmoid(z).reshape(o_ref.shape)             # (1,1,tb)


def _mlp_kernel_single(x_ref, w1_ref, b1_ref, w2_ref, b2_ref, w3_ref, b3_ref,
                       w4t_ref, b4_ref, o_ref):
    # Whole feature dim in one K step: no scratch accumulator round-trip.
    h1 = jnp.dot(x_ref[...], w1_ref[...],
                 preferred_element_type=jnp.float32) + b1_ref[...]
    _tail(h1, w2_ref, b2_ref, w3_ref, b3_ref, w4t_ref, b4_ref, o_ref)


def _mlp_kernel_ktiled(x_ref, w1_ref, b1_ref, w2_ref, b2_ref, w3_ref, b3_ref,
                       w4t_ref, b4_ref, o_ref, acc_ref):
    k = pl.program_id(1)

    @pl.when(k == 0)
    def _():
        acc_ref[...] = jnp.zeros_like(acc_ref)

    # fc1 partial product for this K tile (bf16 operands, f32 accumulation).
    acc_ref[...] += jnp.dot(x_ref[...], w1_ref[...],
                            preferred_element_type=jnp.float32)

    @pl.when(k == pl.num_programs(1) - 1)
    def _():
        _tail(acc_ref[...] + b1_ref[...], w2_ref, b2_ref, w3_ref, b3_ref,
              w4t_ref, b4_ref, o_ref)


def similarity_model_forward(x, params, *, tb=512, tk=512,
                             matmul_dtype=jnp.bfloat16,
                             vmem_limit_bytes=None):
    """x: (B, D) float32.  params: w1..w4 stored (in, out), b1..b4 (1, out)."""
    B, D = x.shape
    f32 = jnp.float32

    # Batch tiling: pad B up to a whole number of tiles (pad rows sliced off).
    tb = min(tb, B)
    B_pad = ((B + tb - 1) // tb) * tb
    if B_pad != B:
        x = jnp.pad(x, ((0, B_pad - B), (0, 0)))
    n_b = B_pad // tb

    # K (feature) tiling for fc1: only tile when D splits into lane-aligned
    # chunks, otherwise keep the whole feature dim in a single step.
    tk = min(tk, D)
    if D % tk != 0 or tk % 128 != 0:
        tk = D
    n_k = D // tk

    xq = x.astype(matmul_dtype)
    w1 = params["w1"].astype(matmul_dtype)
    w2 = params["w2"].astype(matmul_dtype)
    w3 = params["w3"].astype(matmul_dtype)
    w4t = params["w4"].T.astype(matmul_dtype)            # (1, 16): (out, in)
    b1 = params["b1"].astype(f32)
    b2 = params["b2"].astype(f32)
    b3 = params["b3"].astype(f32)
    b4 = params["b4"].astype(f32)

    cp_kwargs = {}
    if vmem_limit_bytes is not None:
        cp_kwargs["vmem_limit_bytes"] = vmem_limit_bytes

    if n_k == 1:
        # Single K step: 1-D batch grid, no accumulator scratch, no phases.
        full = lambda a: pl.BlockSpec(a.shape, lambda i: (0,) * a.ndim)
        grid_spec = pltpu.PrefetchScalarGridSpec(
            num_scalar_prefetch=0,
            grid=(n_b,),
            in_specs=[
                pl.BlockSpec((tb, D), lambda i: (i, 0)),        # x tile
                full(w1), full(b1),
                full(w2), full(b2),
                full(w3), full(b3),
                full(w4t), full(b4),
            ],
            out_specs=pl.BlockSpec((1, 1, tb), lambda i: (i, 0, 0)),
        )
        kernel = _mlp_kernel_single
        semantics = ("parallel",)
    else:
        # Large D: K-tile fc1's contraction with an f32 accumulator scratch.
        full = lambda a: pl.BlockSpec(a.shape, lambda i, k: (0,) * a.ndim)
        grid_spec = pltpu.PrefetchScalarGridSpec(
            num_scalar_prefetch=0,
            grid=(n_b, n_k),
            in_specs=[
                pl.BlockSpec((tb, tk), lambda i, k: (i, k)),    # x tile
                pl.BlockSpec((tk, H1), lambda i, k: (k, 0)),    # w1 K-tile
                full(b1),
                full(w2), full(b2),
                full(w3), full(b3),
                full(w4t), full(b4),
            ],
            out_specs=pl.BlockSpec((1, 1, tb), lambda i, k: (i, 0, 0)),
            scratch_shapes=[pltpu.VMEM((tb, H1), jnp.float32)],
        )
        kernel = _mlp_kernel_ktiled
        semantics = ("parallel", "arbitrary")

    out = pl.pallas_call(
        kernel,
        out_shape=jax.ShapeDtypeStruct((n_b, 1, tb), jnp.float32),
        grid_spec=grid_spec,
        compiler_params=pltpu.CompilerParams(
            dimension_semantics=semantics, **cp_kwargs),
    )(xq, w1, b1, w2, b2, w3, b3, w4t, b4)

    return out.reshape(B_pad, H4)[:B]


def init_params(input_dim, key):
    """Deterministic init mimicking nn.Linear's U(-1/sqrt(fan_in), 1/sqrt(fan_in))."""
    dims = [(input_dim, H1), (H1, H2), (H2, H3), (H3, H4)]
    params = {}
    keys = jax.random.split(key, 2 * len(dims))
    for n, (fan_in, fan_out) in enumerate(dims, start=1):
        bound = 1.0 / jnp.sqrt(jnp.float32(fan_in))
        params[f"w{n}"] = jax.random.uniform(
            keys[2 * (n - 1)], (fan_in, fan_out), jnp.float32, -bound, bound)
        params[f"b{n}"] = jax.random.uniform(
            keys[2 * (n - 1) + 1], (1, fan_out), jnp.float32, -bound, bound)
    return params


def reference_forward(x, p):
    h = jnp.maximum(x @ p["w1"] + p["b1"], 0.0)
    h = jnp.maximum(h @ p["w2"] + p["b2"], 0.0)
    h = jnp.maximum(h @ p["w3"] + p["b3"], 0.0)
    return jax.nn.sigmoid(h @ p["w4"] + p["b4"])


if __name__ == "__main__":
    key = jax.random.PRNGKey(0)
    k_x, k_p, k_x2, k_p2 = jax.random.split(key, 4)

    # Case 1 (single-K kernel): two 128-row batch tiles so the "parallel"
    # batch axis has >= 2 grid steps (keeps both v7x TensorCores busy).
    batch, input_dim = 256, 32
    x = jax.random.normal(k_x, (batch, input_dim), jnp.float32)
    params = init_params(input_dim, k_p)
    out = similarity_model_forward(x, params, tb=128)
    out = jax.block_until_ready(out)
    ref = reference_forward(x, params)
    assert out.shape == (batch, 1)
    # bf16 matmul operands (f32 accumulation) -> relaxed tolerance vs f32 ref.
    assert jnp.allclose(out, ref, atol=2e-2, rtol=2e-2), \
        float(jnp.max(jnp.abs(out - ref)))

    # Case 2 (K-tiled kernel + batch padding): D=256 split into two K tiles,
    # B=192 padded up to 2 x 128 batch tiles.
    batch2, input_dim2 = 192, 256
    x2 = jax.random.normal(k_x2, (batch2, input_dim2), jnp.float32)
    params2 = init_params(input_dim2, k_p2)
    out2 = similarity_model_forward(x2, params2, tb=128, tk=128)
    out2 = jax.block_until_ready(out2)
    ref2 = reference_forward(x2, params2)
    assert out2.shape == (batch2, 1)
    assert jnp.allclose(out2, ref2, atol=2e-2, rtol=2e-2), \
        float(jnp.max(jnp.abs(out2 - ref2)))

    print("KERNEL_OK")
</pallas_src>

<mosaic_0001>
module attributes {stable_mosaic.version = 11 : i64} {
  func.func @_mlp_kernel_single(%arg0: i32, %arg1: memref<128x32xbf16, #tpu.memory_space<vmem>>, %arg2: memref<32x128xbf16, #tpu.memory_space<vmem>>, %arg3: memref<1x128xf32, #tpu.memory_space<vmem>>, %arg4: memref<128x64xbf16, #tpu.memory_space<vmem>>, %arg5: memref<1x64xf32, #tpu.memory_space<vmem>>, %arg6: memref<64x16xbf16, #tpu.memory_space<vmem>>, %arg7: memref<1x16xf32, #tpu.memory_space<vmem>>, %arg8: memref<1x16xbf16, #tpu.memory_space<vmem>>, %arg9: memref<1x1xf32, #tpu.memory_space<vmem>>, %arg10: memref<1x1x128xf32, #tpu.memory_space<vmem>>) attributes {dimension_semantics = [#tpu.dimension_semantics<parallel>], iteration_bounds = array<i64: 2>, scalar_prefetch = 0 : i64, scratch_operands = 0 : i64, tpu.core_type = #tpu.core_type<tc>, window_params = [{transform_indices = @transform_0, window_bounds = array<i64: 128, 32>}, {pipeline_mode = #tpu.pipeline_mode<synchronous>, transform_indices = @transform_1, window_bounds = array<i64: 32, 128>}, {pipeline_mode = #tpu.pipeline_mode<synchronous>, transform_indices = @transform_2, window_bounds = array<i64: 1, 128>}, {pipeline_mode = #tpu.pipeline_mode<synchronous>, transform_indices = @transform_3, window_bounds = array<i64: 128, 64>}, {pipeline_mode = #tpu.pipeline_mode<synchronous>, transform_indices = @transform_4, window_bounds = array<i64: 1, 64>}, {pipeline_mode = #tpu.pipeline_mode<synchronous>, transform_indices = @transform_5, window_bounds = array<i64: 64, 16>}, {pipeline_mode = #tpu.pipeline_mode<synchronous>, transform_indices = @transform_6, window_bounds = array<i64: 1, 16>}, {pipeline_mode = #tpu.pipeline_mode<synchronous>, transform_indices = @transform_7, window_bounds = array<i64: 1, 16>}, {pipeline_mode = #tpu.pipeline_mode<synchronous>, transform_indices = @transform_8, window_bounds = array<i64: 1, 1>}, {transform_indices = @transform_9, window_bounds = array<i64: 1, 1, 128>}]} {
    %c0 = arith.constant 0 : index
    %c0_0 = arith.constant 0 : index
    %0 = vector.load %arg1[%c0, %c0_0] : memref<128x32xbf16, #tpu.memory_space<vmem>>, vector<128x32xbf16>
    %c0_1 = arith.constant 0 : index
    %c0_2 = arith.constant 0 : index
    %1 = vector.load %arg2[%c0_1, %c0_2] : memref<32x128xbf16, #tpu.memory_space<vmem>>, vector<32x128xbf16>
    %cst = arith.constant dense<0.000000e+00> : vector<128x128xf32>
    %2 = tpu.matmul %0, %1, %cst {dimension_numbers = #tpu.dot_dimension_numbers<[1], [0], [0], [1], [0, 0, 1, 1], [], []>} : vector<128x32xbf16>, vector<32x128xbf16>, vector<128x128xf32> -> vector<128x128xf32>
    %c0_3 = arith.constant 0 : index
    %c0_4 = arith.constant 0 : index
    %3 = vector.load %arg3[%c0_3, %c0_4] : memref<1x128xf32, #tpu.memory_space<vmem>>, vector<1x128xf32>
    %4 = vector.broadcast %3 : vector<1x128xf32> to vector<128x128xf32>
    %5 = arith.addf %2, %4 : vector<128x128xf32>
    %cst_5 = arith.constant 0.000000e+00 : f32
    %6 = vector.broadcast %cst_5 : f32 to vector<128x128xf32>
    %7 = arith.maximumf %5, %6 : vector<128x128xf32>
    %8 = arith.truncf %7 : vector<128x128xf32> to vector<128x128xbf16>
    %c0_6 = arith.constant 0 : index
    %c0_7 = arith.constant 0 : index
    %9 = vector.load %arg4[%c0_6, %c0_7] : memref<128x64xbf16, #tpu.memory_space<vmem>>, vector<128x64xbf16>
    %cst_8 = arith.constant dense<0.000000e+00> : vector<128x64xf32>
    %10 = tpu.matmul %8, %9, %cst_8 {dimension_numbers = #tpu.dot_dimension_numbers<[1], [0], [0], [1], [0, 0, 1, 1], [], []>} : vector<128x128xbf16>, vector<128x64xbf16>, vector<128x64xf32> -> vector<128x64xf32>
    %c0_9 = arith.constant 0 : index
    %c0_10 = arith.constant 0 : index
    %11 = vector.load %arg5[%c0_9, %c0_10] : memref<1x64xf32, #tpu.memory_space<vmem>>, vector<1x64xf32>
    %12 = vector.broadcast %11 : vector<1x64xf32> to vector<128x64xf32>
    %13 = arith.addf %10, %12 : vector<128x64xf32>
    %cst_11 = arith.constant 0.000000e+00 : f32
    %14 = vector.broadcast %cst_11 : f32 to vector<128x64xf32>
    %15 = arith.maximumf %13, %14 : vector<128x64xf32>
    %16 = arith.truncf %15 : vector<128x64xf32> to vector<128x64xbf16>
    %c0_12 = arith.constant 0 : index
    %c0_13 = arith.constant 0 : index
    %17 = vector.load %arg6[%c0_12, %c0_13] : memref<64x16xbf16, #tpu.memory_space<vmem>>, vector<64x16xbf16>
    %cst_14 = arith.constant dense<0.000000e+00> : vector<128x16xf32>
    %18 = tpu.matmul %16, %17, %cst_14 {dimension_numbers = #tpu.dot_dimension_numbers<[1], [0], [0], [1], [0, 0, 1, 1], [], []>} : vector<128x64xbf16>, vector<64x16xbf16>, vector<128x16xf32> -> vector<128x16xf32>
    %c0_15 = arith.constant 0 : index
    %c0_16 = arith.constant 0 : index
    %19 = vector.load %arg7[%c0_15, %c0_16] : memref<1x16xf32, #tpu.memory_space<vmem>>, vector<1x16xf32>
    %20 = vector.broadcast %19 : vector<1x16xf32> to vector<128x16xf32>
    %21 = arith.addf %18, %20 : vector<128x16xf32>
    %cst_17 = arith.constant 0.000000e+00 : f32
    %22 = vector.broadcast %cst_17 : f32 to vector<128x16xf32>
    %23 = arith.maximumf %21, %22 : vector<128x16xf32>
    %c0_18 = arith.constant 0 : index
    %c0_19 = arith.constant 0 : index
    %24 = vector.load %arg8[%c0_18, %c0_19] : memref<1x16xbf16, #tpu.memory_space<vmem>>, vector<1x16xbf16>
    %25 = arith.truncf %23 : vector<128x16xf32> to vector<128x16xbf16>
    %cst_20 = arith.constant dense<0.000000e+00> : vector<1x128xf32>
    %26 = tpu.matmul %24, %25, %cst_20 {dimension_numbers = #tpu.dot_dimension_numbers<[1], [1], [0], [0], [0, 0, 1, 0], [], []>} : vector<1x16xbf16>, vector<128x16xbf16>, vector<1x128xf32> -> vector<1x128xf32>
    %c0_21 = arith.constant 0 : index
    %c0_22 = arith.constant 0 : index
    %27 = vector.load %arg9[%c0_21, %c0_22] : memref<1x1xf32, #tpu.memory_space<vmem>>, vector<1x1xf32>
    %28 = vector.extract %27[0, 0] : f32 from vector<1x1xf32>
    %29 = vector.broadcast %28 : f32 to vector<1x128xf32>
    %30 = arith.addf %26, %29 : vector<1x128xf32>
    %31 = arith.negf %30 : vector<1x128xf32>
    %32 = math.exp %31 : vector<1x128xf32>
    %cst_23 = arith.constant 1.000000e+00 : f32
    %33 = vector.broadcast %cst_23 : f32 to vector<1x128xf32>
    %34 = arith.addf %33, %32 : vector<1x128xf32>
    %35 = arith.divf %33, %34 : vector<1x128xf32>
    %36 = vector.shape_cast %35 : vector<1x128xf32> to vector<1x1x128xf32>
    %c0_24 = arith.constant 0 : index
    %c0_25 = arith.constant 0 : index
    %c0_26 = arith.constant 0 : index
    %37 = vector.load %arg10[%c0_24, %c0_25, %c0_26] : memref<1x1x128xf32, #tpu.memory_space<vmem>>, vector<1x1x128xf32>
    tpu.vector_store %arg10[%c0_24, %c0_25, %c0_26], %36 {strides = array<i32>} : memref<1x1x128xf32, #tpu.memory_space<vmem>>, vector<1x1x128xf32>,
    return
  }
  func.func @transform_0(%arg0: i32) -> (i32, i32) {
    %c0_i32 = arith.constant 0 : i32
    %c0_i32_0 = arith.constant 0 : i32
    return %arg0, %c0_i32 : i32, i32
  }
  func.func @transform_1(%arg0: i32) -> (i32, i32) {
    %c0_i32 = arith.constant 0 : i32
    %c0_i32_0 = arith.constant 0 : i32
    %c0_i32_1 = arith.constant 0 : i32
    return %c0_i32, %c0_i32_0 : i32, i32
  }
  func.func @transform_2(%arg0: i32) -> (i32, i32) {
    %c0_i32 = arith.constant 0 : i32
    %c0_i32_0 = arith.constant 0 : i32
    %c0_i32_1 = arith.constant 0 : i32
    return %c0_i32, %c0_i32_0 : i32, i32
  }
  func.func @transform_3(%arg0: i32) -> (i32, i32) {
    %c0_i32 = arith.constant 0 : i32
    %c0_i32_0 = arith.constant 0 : i32
    %c0_i32_1 = arith.constant 0 : i32
    return %c0_i32, %c0_i32_0 : i32, i32
  }
  func.func @transform_4(%arg0: i32) -> (i32, i32) {
    %c0_i32 = arith.constant 0 : i32
    %c0_i32_0 = arith.constant 0 : i32
    %c0_i32_1 = arith.constant 0 : i32
    return %c0_i32, %c0_i32_0 : i32, i32
  }
  func.func @transform_5(%arg0: i32) -> (i32, i32) {
    %c0_i32 = arith.constant 0 : i32
    %c0_i32_0 = arith.constant 0 : i32
    %c0_i32_1 = arith.constant 0 : i32
    return %c0_i32, %c0_i32_0 : i32, i32
  }
  func.func @transform_6(%arg0: i32) -> (i32, i32) {
    %c0_i32 = arith.constant 0 : i32
    %c0_i32_0 = arith.constant 0 : i32
    %c0_i32_1 = arith.constant 0 : i32
    return %c0_i32, %c0_i32_0 : i32, i32
  }
  func.func @transform_7(%arg0: i32) -> (i32, i32) {
    %c0_i32 = arith.constant 0 : i32
    %c0_i32_0 = arith.constant 0 : i32
    %c0_i32_1 = arith.constant 0 : i32
    return %c0_i32, %c0_i32_0 : i32, i32
  }
  func.func @transform_8(%arg0: i32) -> (i32, i32) {
    %c0_i32 = arith.constant 0 : i32
    %c0_i32_0 = arith.constant 0 : i32
    %c0_i32_1 = arith.constant 0 : i32
    return %c0_i32, %c0_i32_0 : i32, i32
  }
  func.func @transform_9(%arg0: i32) -> (i32, i32, i32) {
    %c0_i32 = arith.constant 0 : i32
    %c0_i32_0 = arith.constant 0 : i32
    %c0_i32_1 = arith.constant 0 : i32
    return %arg0, %c0_i32, %c0_i32_0 : i32, i32, i32
  }
}

</mosaic_0001>

<bundles_post_ra>
// kernel: tpu_custom_call.1
= control target key start
LH: loop header
LB: loop body
LE: loop exit
PB: predicated region body
PF: predicated region fallthrough
CT: control target
= control target key end

     0   :  { %s1670_s0 = inlined_call_operand.vmem [shape: bf16[256,32], index: 0, kind: input, shape index: {}]   ;;  %s1671_s1 = inlined_call_operand.vmem [shape: bf16[32,128], index: 1, kind: input, shape index: {}]   ;;  %s1672_s2 = inlined_call_operand.vmem [shape: f32[1,128], index: 2, kind: input, shape index: {}]   ;;  %s1673_s3 = inlined_call_operand.vmem [shape: bf16[128,64], index: 3, kind: input, shape index: {}]   ;;  %s1674_s4 = inlined_call_operand.vmem [shape: f32[1,64], index: 4, kind: input, shape index: {}]   ;;  %s1675_s5 = inlined_call_operand.vmem [shape: bf16[64,16], index: 5, kind: input, shape index: {}]   ;;  %s1676_s6 = inlined_call_operand.vmem [shape: f32[1,16], index: 6, kind: input, shape index: {}]   ;;  %s1677_s7 = inlined_call_operand.vmem [shape: bf16[1,16], index: 7, kind: input, shape index: {}]   ;;  %s1678_s8 = inlined_call_operand.<no memory space> [shape: f32[1,1], index: 8, kind: input, shape index: {}]   ;;  %s1679_s9 = inlined_call_operand.hbm [shape: f32[2,1,128], index: 9, kind: output, shape index: {}]  }
   0x1   :  { %v14_v0 = vstv %s1678_s8 }
   0x2   :  { %15 = vst [vmem:[#allocation2] sm:$0x1] %v14_v0 }
   0x3   :  { %16 = vsyncpa [#allocation4], 0 }
   0x4   :  { %18 = vsyncpa [#allocation4 + $0x1], 0  ;;  %s1466_s11 = smov 0   ;;  %s1468_s12 = smov 0  }
   0x5   :  { %s1470_s13 = smov 0   ;;  %s1472_s14 = smov 0  }
   0x6 LB: > { %s1083_s8 = sadd.s32 4294967295, %s1408_s14   ;;  %s1084_s15 = sadd.s32 4294967294, %s1408_s14   ;;  %s1408_s14 = sphi %s1472_s14, %s1685_s14   ;;  %s1404_s13 = sphi %s1470_s13, %s1684_s13   ;;  %s1400_s12 = sphi %s1468_s12, %s1683_s12   ;;  %s1396_s11 = sphi %s1466_s11, %s1682_s11  }
   0x7   : > { %s1489_s16 = sadd.s32 1, %s1408_s14   ;;  %s225_s17 = sadd.s32 1, %s1404_s13 }
   0x8   : > { %s222_s18 = ssub.s32 %s1408_s14, %s1489_s16  ;;  %p235_p0 = scmp.ne.s32.totalorder %s1404_s13, %s1400_s12 }
   0x9   : > { %p223_p1 = scmp.eq.s32.totalorder %s222_s18, 0  ;;  %p236_p2 = scmp.eq.s32.totalorder %s1083_s8, 1 }
   0xa   : > { %p241_p3 = scmp.ne.s32.totalorder %s1400_s12, %s1396_s11  ;;  %p242_p4 = scmp.eq.s32.totalorder %s1084_s15, 1 }
   0xb   : > { %s1499_s19 = scalar_select %p223_p1, %s1404_s13, %s225_s17  }
   0xc   : > { %p1501_p5 = por %p236_p2, %p235_p0  ;;  %p1505_p6 = por %p242_p4, %p241_p3 }
   0xd   : > { %p1087_p7 = scmp.ge.s32.totalorder %s1408_s14, 1  ;;  %p293_p8 = scmp.lt.s32.totalorder %s1408_s14, 3 }
   0xf   : > { %p294_p9 = pnand %p1087_p7, %p293_p8 }
  0x10   : > { %s1514_s24 = sshll.u32 (!%p294_p9), %s1083_s8, 4  ;;  %s326_s26 = sand.u32 (!%p294_p9), 1, %s1400_s12  }
  0x11   : > { %297 = sbr.rel (%p294_p9) target bundleno = 974 (0x3ce), region = 56  ;;  %p329_p10 = scmp.lt.s32.totalorder (!%p294_p9), %s1514_s24, 31 }
  0x12   : > { %s327_s27 = scalar_lea.vmem (!%p294_p9), [#allocation3], %s326_s26  ;;  %s1635_s10 = scalar_lea.hbm (!%p294_p9), %s1679_s9, %s1514_s24 }
  0x13   : > { %s1029_s28 = sshll.u32 (!%p294_p9), %s327_s27, 4  ;;  %s1412_s17 = smov (!%p294_p9), [#allocation3]   ;;  %s1030_s28 = int_to_ptr.vmem [resolvable:$true] %s1029_s28 }
  0x14   : > { %s1348_s15 = scalar_lea.vmem (!%p294_p9), %s1030_s28, 16 }
  0x15   : > { %p1349_p11 = scmp.ne.s32.totalorder (!%p294_p9), %s1030_s28, %s1348_s15 }
  0x16   : > { %v1322_v1 = vld [vmem:[%s1671_s1 + $0x8] sm:$0xff]   ;;  %v1323_v2 = vld [vmem:[%s1671_s1] sm:$0xff]   ;;  %v1332_v3 = vld [vmem:[%s1673_s3 + $0x38] sm:$0xff]   ;;  %s330_s29 = scalar_select %p329_p10, %s1514_s24, 31  ;;  %vm414_vm0 = vcmask 261120   ;;  %vm791_vm1 = vcmask 523264  }
  0x17   : > { %1183 = vmatprep.subr.bf16.mxu0 %v1322_v1  ;;  %v1333_v4 = vld [vmem:[%s1673_s3 + $0x30] sm:$0xff]   ;;  %1203 = vmatprep.subr.bf16.mxu1 %v1332_v3  ;;  %v1334_v5 = vld [vmem:[%s1673_s3 + $0x28] sm:$0xff]   ;;  %v1335_v9 = vld [vmem:[%s1673_s3 + $0x20] sm:$0xff]   ;;  %vm1411_vm2 = vmmov 0   ;;  %vm941_vm3 = vcmask 130048   ;;  %p1350_p12 = pnand %p1349_p11, %p1501_p5 }
  0x18   : > { %1184 = vmatpush3.bf16.msra.mxu0 %v1322_v1  ;;  %s1089_s8 = sshll.u32 %s330_s29, 2  ;;  %1204 = vmatpush3.bf16.msra.mxu1 %v1332_v3  ;;  %v1336_v10 = vld [vmem:[%s1673_s3 + $0x18] sm:$0xff]   ;;  %v1337_v16 = vld [vmem:[%s1673_s3 + $0x10] sm:$0xff]   ;;  %v1338_v17 = vld [vmem:[%s1673_s3 + $0x8] sm:$0xff]  }
  0x19   : > { %1185 = vmatprep.subr.bf16.mxu0 %v1323_v2  ;;  %s332_s18 = scalar_lea.vmem %s1670_s0, %s1089_s8  ;;  %1205 = vmatprep.subr.bf16.mxu1 %v1333_v4  ;;  %v1339_v18 = vld [vmem:[%s1673_s3] sm:$0xff]   ;;  %v1340_v19 = vld [vmem:[%s1675_s5 + $0x18] sm:$0xff]   ;;  %v1341_v20 = vld [vmem:[%s1675_s5 + $0x10] sm:$0xff]   ;;  %s1017_s8 = scalar_lea.sflag [#allocation4], %s326_s26 }
  0x1a   : > { %v1324_v6 = vld [vmem:[%s332_s18] sm:$0xff]   ;;  %v1325_v7 = vld [vmem:[%s332_s18 + $0x8] sm:$0xff]   ;;  %v1326_v8 = vld [vmem:[%s332_s18 + $0x10] sm:$0xff]   ;;  %p1351_p13 = pneg %p1350_p12 }
  0x1b   : > { %1187 = vmatprep.mubr.msk.bf16.mxu0 %vm414_vm0, %v1324_v6  ;;  %v1327_v11 = vld [vmem:[%s332_s18 + $0x18] sm:$0xff]   ;;  %v1328_v12 = vld [vmem:[%s332_s18 + $0x20] sm:$0xff]   ;;  %v1329_v13 = vld [vmem:[%s332_s18 + $0x28] sm:$0xff]  }
  0x1c   : > { %1186 = vmatpush3.bf16.msra.mxu0 %v1323_v2  ;;  %1206 = vmatpush3.bf16.msra.mxu1 %v1333_v4  ;;  %v1330_v14 = vld [vmem:[%s332_s18 + $0x30] sm:$0xff]   ;;  %v1331_v15 = vld [vmem:[%s332_s18 + $0x38] sm:$0xff]   ;;  %v1342_v21 = vld [vmem:[%s1675_s5 + $0x8] sm:$0xff]   ;;  %s1352_s18 = sshll.u32 %s1412_s17, 4  ;;  %s1353_s18 = int_to_ptr.vmem [resolvable:$false] %s1352_s18 }
  0x1d   : > { %1207 = vmatprep.subr.bf16.mxu1 %v1334_v5  ;;  %1235 = vmatprep.subr.bf16.mxu0 %v1340_v19  ;;  %v1090_v24 = vld [vmem:[%s1672_s2] ss:$0 sm:$0xff]  ;;  %s1354_s22 = scalar_lea.vmem %s1353_s18, 32  ;;  %p1355_p0 = scmp.lt.s32.totalorder %s1030_s28, %s1353_s18 }
  0x1e   : > { %p1356_p1 = scmp.lt.s32.totalorder %s1354_s22, %s1348_s15 }
  0x1f   : > { %1188 = vmatmul.mubr.msk.bf16.vlgmr.msra.gmra.mxu0 %vm414_vm0, %v1325_v7 }
  0x20   : > { %1191 = vmatprep.mubr.msk.bf16.mxu0 %vm414_vm0, %v1326_v8  ;;  %1208 = vmatpush3.bf16.msra.mxu1 %v1334_v5  ;;  %p1357_p2 = por %p1356_p1, %p1355_p0 }
  0x21   : > { %1209 = vmatprep.subr.bf16.mxu1 %v1335_v9  ;;  %1236 = vmatpush3.bf16.msra.mxu0 %v1340_v19 }
  0x22   : > { %1237 = vmatprep.subr.bf16.mxu0 %v1341_v20  ;;  %p1358_p3 = pnand %p1357_p2, %p1351_p13 }
  0x24   : > { %1210 = vmatpush3.bf16.msra.mxu1 %v1335_v9 }
  0x25   : > { %1211 = vmatprep.subr.bf16.mxu1 %v1336_v10  ;;  %1238 = vmatpush3.bf16.msra.mxu0 %v1341_v20 }
  0x26   : > { %1239 = vmatprep.subr.bf16.mxu0 %v1342_v21 }
  0x27   : > { %1192 = vmatmul.mubr.msk.bf16.gmra.mxu0 %vm414_vm0, %v1327_v11 }
  0x28   : > { %1195 = vmatprep.mubr.msk.bf16.mxu0 %vm414_vm0, %v1328_v12  ;;  %1212 = vmatpush3.bf16.msra.mxu1 %v1336_v10 }
  0x29   : > { %1213 = vmatprep.subr.bf16.mxu1 %v1337_v16  ;;  %1240 = vmatpush3.bf16.msra.mxu0 %v1342_v21 }
  0x2c   : > { %1214 = vmatpush3.bf16.msra.mxu1 %v1337_v16 }
  0x2d   : > { %1215 = vmatprep.subr.bf16.mxu1 %v1338_v17 }
  0x2f   : > { %1196 = vmatmul.mubr.msk.bf16.gmra.mxu0 %vm414_vm0, %v1329_v13 }
  0x30   : > { %1199 = vmatprep.mubr.msk.bf16.mxu0 %vm414_vm0, %v1330_v14  ;;  %1216 = vmatpush3.bf16.msra.mxu1 %v1338_v17 }
  0x31   : > { %1217 = vmatprep.subr.bf16.mxu1 %v1339_v18 }
  0x34   : > { %1218 = vmatpush3.bf16.msra.mxu1 %v1339_v18  ;;  %v1109_v18 = vld [vmem:[%s1674_s4] ss:$0 sm:$0xff] }
  0x37   : > { %1200 = vmatmul.mubr.msk.bf16.gmra.mxu0 %vm414_vm0, %v1331_v15  ;;  %v1343_v15 = vld [vmem:[%s1675_s5] sm:$0xff]  }
  0x38   : > { %1241 = vmatprep.subr.bf16.mxu0 %v1343_v15 }
  0x39   : > { %1242 = vmatpush3.bf16.msra.mxu0 %v1343_v15 }
  0xdf   : > { %v1189_v22 = vpop.f32.mrf.mxu0 }
  0xe0   : > { %v482_v28 = vadd.f32 %v1189_v22, %v1090_v24 }
  0xe1   : > { %v473_v23 = vpop.f32.mrf.mxu0 }
  0xe2   : > { %v474_v26 = vadd.f32 %v1090_v24, %v473_v23  ;;  %v538_v35 = vmax.f32 %v482_v28, 0.0 }
  0xe3   : > { %v1190_v25 = vpop.f32.mrf.mxu0 }
  0xe4   : > { %v485_v27 = vadd.f32 %v1190_v25, %v1090_v24  ;;  %v536_v33 = vmax.f32 %v474_v26, 0.0 }
  0xe5   : > { %v476_v29 = vpop.f32.mrf.mxu0 }
  0xe6   : > { %v477_v30 = vadd.f32 %v1090_v24, %v476_v29  ;;  %v539_v31 = vmax.f32 %v485_v27, 0.0 }
  0xe7   : > { %v1193_v32 = vpop.f32.mrf.mxu0 }
  0xe8   : > { %v537_v34 = vmax.f32 %v477_v30, 0.0  ;;  %v553_v38 = vpack.c.bf16 %v539_v31, %v538_v35  ;;  %v498_v42 = vadd.f32 %v1193_v32, %v1090_v24 }
  0xe9   : > { %v489_v36 = vpop.f32.mrf.mxu0 }
  0xea   : > { %v552_v37 = vpack.c.bf16 %v537_v34, %v536_v33  ;;  %v490_v40 = vadd.f32 %v1090_v24, %v489_v36  ;;  %v542_v49 = vmax.f32 %v498_v42, 0.0 }
  0xeb   : > { %v1194_v39 = vpop.f32.mrf.mxu0 }
  0xec   : > { %v501_v41 = vadd.f32 %v1194_v39, %v1090_v24  ;;  %1219 = vmatprep.mubr.bf16.mxu1 %v552_v37  ;;  %v540_v47 = vmax.f32 %v490_v40, 0.0 }
  0xed   : > { %v492_v43 = vpop.f32.mrf.mxu0  ;;  %1220 = vmatmul.mubr.bf16.vlgmr.msra.gmra.mxu1 %v553_v38 }
  0xee   : > { %v493_v44 = vadd.f32 %v1090_v24, %v492_v43  ;;  %v543_v45 = vmax.f32 %v501_v41, 0.0 }
  0xef   : > { %v1197_v46 = vpop.f32.mrf.mxu0 }
  0xf0   : > { %v541_v48 = vmax.f32 %v493_v44, 0.0  ;;  %v555_v52 = vpack.c.bf16 %v543_v45, %v542_v49  ;;  %v514_v56 = vadd.f32 %v1197_v46, %v1090_v24 }
  0xf1   : > { %v505_v50 = vpop.f32.mrf.mxu0 }
  0xf2   : > { %v554_v51 = vpack.c.bf16 %v541_v48, %v540_v47  ;;  %v506_v54 = vadd.f32 %v1090_v24, %v505_v50  ;;  %v546_v63 = vmax.f32 %v514_v56, 0.0 }
  0xf3   : > { %v1198_v53 = vpop.f32.mrf.mxu0 }
  0xf4   : > { %v517_v55 = vadd.f32 %v1198_v53, %v1090_v24  ;;  %1223 = vmatprep.mubr.bf16.mxu1 %v554_v51  ;;  %v544_v61 = vmax.f32 %v506_v54, 0.0 }
  0xf5   : > { %v508_v57 = vpop.f32.mrf.mxu0  ;;  %1224 = vmatmul.mubr.bf16.gmra.mxu1 %v555_v52 }
  0xf6   : > { %v509_v58 = vadd.f32 %v1090_v24, %v508_v57  ;;  %v547_v59 = vmax.f32 %v517_v55, 0.0 }
  0xf7   : > { %v1201_v60 = vpop.f32.mrf.mxu0 }
  0xf8   : > { %v545_v62 = vmax.f32 %v509_v58, 0.0  ;;  %v557_v2 = vpack.c.bf16 %v547_v59, %v546_v63  ;;  %v530_v6 = vadd.f32 %v1201_v60, %v1090_v24 }
  0xf9   : > { %v521_v0 = vpop.f32.mrf.mxu0 }
  0xfa   : > { %v556_v1 = vpack.c.bf16 %v545_v62, %v544_v61  ;;  %v522_v4 = vadd.f32 %v1090_v24, %v521_v0  ;;  %v550_v12 = vmax.f32 %v530_v6, 0.0 }
  0xfb   : > { %v1202_v3 = vpop.f32.mrf.mxu0 }
  0xfc   : > { %v533_v5 = vadd.f32 %v1202_v3, %v1090_v24  ;;  %1227 = vmatprep.mubr.bf16.mxu1 %v556_v1  ;;  %v548_v10 = vmax.f32 %v522_v4, 0.0 }
  0xfd   : > { %v524_v7 = vpop.f32.mrf.mxu0  ;;  %1228 = vmatmul.mubr.bf16.gmra.mxu1 %v557_v2 }
  0xfe   : > { %v525_v8 = vadd.f32 %v1090_v24, %v524_v7  ;;  %v551_v9 = vmax.f32 %v533_v5, 0.0 }
 0x100   : > { %v549_v11 = vmax.f32 %v525_v8, 0.0  ;;  %v559_v14 = vpack.c.bf16 %v551_v9, %v550_v12  ;;  %v1410_v9 = vmov 0.0   ;;  %v1587_v12 = vld [vmem:[%s1676_s6] ss:$0 sm:$0xff] }
 0x101   : > { %1259 = vmatprep.subr.bf16.mxu1 %v1410_v9 }
 0x102   : > { %v558_v13 = vpack.c.bf16 %v549_v11, %v548_v10  ;;  %v938_v10 = vld [vmem:[#allocation2] sm:$0x1] }
 0x103   : > { %1279 = vpush %v938_v10 }
 0x104   : > { %1231 = vmatprep.mubr.bf16.mxu1 %v558_v13 }
 0x105   : > { %1232 = vmatmul.mubr.bf16.gmra.mxu1 %v559_v14 }
 0x106   : > { %1275 = vmatprep.mubr.msk.bf16.mxu1 %vm1411_vm2, %v1410_v9 }
 0x134   : > { %s1280_s25 = spop %1279 }
 0x1ad   : > { %v1221_v16 = vpop.f32.mrf.mxu1 }
 0x1ae   : > { %v674_v22 = vadd.f32 %v1221_v16, %v1109_v18 }
 0x1af   : > { %v665_v17 = vpop.f32.mrf.mxu1 }
 0x1b0   : > { %v666_v20 = vadd.f32 %v1109_v18, %v665_v17  ;;  %v730_v29 = vmax.f32 %v674_v22, 0.0 }
 0x1b1   : > { %v1222_v19 = vpop.f32.mrf.mxu1 }
 0x1b2   : > { %v677_v21 = vadd.f32 %v1222_v19, %v1109_v18  ;;  %v728_v27 = vmax.f32 %v666_v20, 0.0 }
 0x1b3   : > { %v668_v23 = vpop.f32.mrf.mxu1 }
 0x1b4   : > { %v669_v24 = vadd.f32 %v1109_v18, %v668_v23  ;;  %v731_v25 = vmax.f32 %v677_v21, 0.0 }
 0x1b5   : > { %v1225_v26 = vpop.f32.mrf.mxu1 }
 0x1b6   : > { %v729_v28 = vmax.f32 %v669_v24, 0.0  ;;  %v745_v32 = vpack.c.bf16 %v731_v25, %v730_v29  ;;  %v690_v36 = vadd.f32 %v1225_v26, %v1109_v18 }
 0x1b7   : > { %v681_v30 = vpop.f32.mrf.mxu1 }
 0x1b8   : > { %v744_v31 = vpack.c.bf16 %v729_v28, %v728_v27  ;;  %v682_v34 = vadd.f32 %v1109_v18, %v681_v30  ;;  %v734_v43 = vmax.f32 %v690_v36, 0.0 }
 0x1b9   : > { %v1226_v33 = vpop.f32.mrf.mxu1 }
 0x1ba   : > { %v693_v35 = vadd.f32 %v1226_v33, %v1109_v18  ;;  %1243 = vmatprep.mubr.msk.bf16.mxu0 %vm791_vm1, %v744_v31  ;;  %v732_v41 = vmax.f32 %v682_v34, 0.0 }
 0x1bb   : > { %v684_v37 = vpop.f32.mrf.mxu1  ;;  %1244 = vmatmul.mubr.msk.bf16.vlgmr.msra.gmra.mxu0 %vm791_vm1, %v745_v32 }
 0x1bc   : > { %v685_v38 = vadd.f32 %v1109_v18, %v684_v37  ;;  %v735_v39 = vmax.f32 %v693_v35, 0.0 }
 0x1bd   : > { %v1229_v40 = vpop.f32.mrf.mxu1 }
 0x1be   : > { %v733_v42 = vmax.f32 %v685_v38, 0.0  ;;  %v747_v46 = vpack.c.bf16 %v735_v39, %v734_v43  ;;  %v706_v50 = vadd.f32 %v1229_v40, %v1109_v18 }
 0x1bf   : > { %v697_v44 = vpop.f32.mrf.mxu1 }
 0x1c0   : > { %v746_v45 = vpack.c.bf16 %v733_v42, %v732_v41  ;;  %v698_v48 = vadd.f32 %v1109_v18, %v697_v44  ;;  %v738_v57 = vmax.f32 %v706_v50, 0.0 }
 0x1c1   : > { %v1230_v47 = vpop.f32.mrf.mxu1 }
 0x1c2   : > { %v709_v49 = vadd.f32 %v1230_v47, %v1109_v18  ;;  %1247 = vmatprep.mubr.msk.bf16.mxu0 %vm791_vm1, %v746_v45  ;;  %v736_v55 = vmax.f32 %v698_v48, 0.0 }
 0x1c3   : > { %v700_v51 = vpop.f32.mrf.mxu1  ;;  %1248 = vmatmul.mubr.msk.bf16.gmra.mxu0 %vm791_vm1, %v747_v46 }
 0x1c4   : > { %v701_v52 = vadd.f32 %v1109_v18, %v700_v51  ;;  %v739_v53 = vmax.f32 %v709_v49, 0.0 }
 0x1c5   : > { %v1233_v54 = vpop.f32.mrf.mxu1 }
 0x1c6   : > { %v737_v56 = vmax.f32 %v701_v52, 0.0  ;;  %v749_v60 = vpack.c.bf16 %v739_v53, %v738_v57  ;;  %v722_v0 = vadd.f32 %v1233_v54, %v1109_v18 }
 0x1c7   : > { %v713_v58 = vpop.f32.mrf.mxu1 }
 0x1c8   : > { %v748_v59 = vpack.c.bf16 %v737_v56, %v736_v55  ;;  %v714_v62 = vadd.f32 %v1109_v18, %v713_v58  ;;  %v742_v6 = vmax.f32 %v722_v0, 0.0 }
 0x1c9   : > { %v1234_v61 = vpop.f32.mrf.mxu1 }
 0x1ca   : > { %v725_v63 = vadd.f32 %v1234_v61, %v1109_v18  ;;  %1251 = vmatprep.mubr.msk.bf16.mxu0 %vm791_vm1, %v748_v59  ;;  %v740_v4 = vmax.f32 %v714_v62, 0.0 }
 0x1cb   : > { %v716_v1 = vpop.f32.mrf.mxu1  ;;  %1252 = vmatmul.mubr.msk.bf16.gmra.mxu0 %vm791_vm1, %v749_v60 }
 0x1cc   : > { %v717_v2 = vadd.f32 %v1109_v18, %v716_v1  ;;  %v743_v3 = vmax.f32 %v725_v63, 0.0 }
 0x1ce   : > { %v741_v5 = vmax.f32 %v717_v2, 0.0  ;;  %v751_v8 = vpack.c.bf16 %v743_v3, %v742_v6 }
 0x1d0   : > { %v750_v7 = vpack.c.bf16 %v741_v5, %v740_v4 }
 0x1d2   : > { %1255 = vmatprep.mubr.msk.bf16.mxu0 %vm791_vm1, %v750_v7 }
 0x1d3   : > { %1256 = vmatmul.mubr.msk.bf16.gmra.mxu0 %vm791_vm1, %v751_v8 }
 0x27b   : > { %v1245_v11 = vpop.f32.mrf.mxu0 }
 0x27c   : > { %v859_v14 = vadd.f32 %v1245_v11, %v1587_v12 }
 0x27d   : > { %v850_v13 = vpop.f32.mrf.mxu0 }
 0x27e   : > { %v851_v16 = vadd.f32 %v1587_v12, %v850_v13  ;;  %v915_v19 = vmax.f32 %v859_v14, 0.0  ;;  %v929_v13 = vld [vmem:[%s1677_s7] sm:$0x1]  ;;  %v940_v14 = vstv %s1280_s25 }
 0x27f   : > { %v1246_v15 = vpop.f32.mrf.mxu0 }
 0x280   : > { %v862_v17 = vadd.f32 %v1246_v15, %v1587_v12  ;;  %v913_v23 = vmax.f32 %v851_v16, 0.0 }
 0x281   : > { %v853_v18 = vpop.f32.mrf.mxu0 }
 0x282   : > { %v916_v20 = vmax.f32 %v862_v17, 0.0  ;;  %v854_v21 = vadd.f32 %v1587_v12, %v853_v18 }
 0x283   : > { %v1249_v22 = vpop.f32.mrf.mxu0 }
 0x284   : > { %v1593_v24 = vpack.c.bf16 %v916_v20, %v915_v19  ;;  %v914_v25 = vmax.f32 %v854_v21, 0.0  ;;  %v875_v62 = vadd.f32 %v1249_v22, %v1587_v12 }
 0x285   : > { %v866_v26 = vpop.f32.mrf.mxu0 }
 0x286   : > { %v1595_v27 = vpack.c.bf16 %v914_v25, %v913_v23  ;;  %v919_v1 = vmax.f32 %v875_v62, 0.0  ;;  %v867_v4 = vadd.f32 %v1587_v12, %v866_v26  ;;  %v949_v11 = vsel %vm941_vm3, %v1593_v24, 0 }
 0x287   : > { %v1250_v28 = vpop.f32.mrf.mxu0 }
 0x288   : > { %v878_v60 = vadd.f32 %v1250_v28, %v1587_v12  ;;  %v917_v7 = vmax.f32 %v867_v4, 0.0 }
 0x289   : > { %v869_v29 = vpop.f32.mrf.mxu0 }
 0x28a   : > { %v920_v63 = vmax.f32 %v878_v60, 0.0  ;;  %v870_v3 = vadd.f32 %v1587_v12, %v869_v29 }
 0x28b   : > { %v1253_v30 = vpop.f32.mrf.mxu0 }
 0x28c   : > { %v891_v50 = vadd.f32 %v1253_v30, %v1587_v12  ;;  %v933_v2 = vpack.c.bf16 %v920_v63, %v919_v1  ;;  %v918_v5 = vmax.f32 %v870_v3, 0.0 }
 0x28d   : > { %v882_v31 = vpop.f32.mrf.mxu0 }
 0x28e   : > { %v923_v53 = vmax.f32 %v891_v50, 0.0  ;;  %v883_v56 = vadd.f32 %v1587_v12, %v882_v31  ;;  %v955_v6 = vsel %vm941_vm3, %v933_v2, 0  ;;  %v932_v8 = vpack.c.bf16 %v918_v5, %v917_v7 }
 0x28f   : > { %v1254_v32 = vpop.f32.mrf.mxu0 }
 0x290   : > { %v894_v48 = vadd.f32 %v1254_v32, %v1587_v12  ;;  %v921_v59 = vmax.f32 %v883_v56, 0.0  ;;  %v952_v10 = vsel %vm941_vm3, %v932_v8, 0 }
 0x291   : > { %v885_v33 = vpop.f32.mrf.mxu0 }
 0x292   : > { %v924_v51 = vmax.f32 %v894_v48, 0.0  ;;  %v886_v55 = vadd.f32 %v1587_v12, %v885_v33 }
 0x293   : > { %v1257_v34 = vpop.f32.mrf.mxu0 }
 0x294   : > { %v907_v36 = vadd.f32 %v1257_v34, %v1587_v12  ;;  %v935_v54 = vpack.c.bf16 %v924_v51, %v923_v53  ;;  %v922_v57 = vmax.f32 %v886_v55, 0.0 }
 0x295   : > { %v898_v35 = vpop.f32.mrf.mxu0 }
 0x296   : > { %v927_v40 = vmax.f32 %v907_v36, 0.0  ;;  %v899_v43 = vadd.f32 %v1587_v12, %v898_v35  ;;  %v961_v58 = vsel %vm941_vm3, %v935_v54, 0  ;;  %v934_v61 = vpack.c.bf16 %v922_v57, %v921_v59 }
 0x297   : > { %v1258_v37 = vpop.f32.mrf.mxu0 }
 0x298   : > { %v910_v38 = vadd.f32 %v1258_v37, %v1587_v12  ;;  %v925_v47 = vmax.f32 %v899_v43, 0.0  ;;  %v958_v0 = vsel %vm941_vm3, %v934_v61, 0 }
 0x299   : > { %v901_v39 = vpop.f32.mrf.mxu0 }
 0x29a   : > { %v928_v41 = vmax.f32 %v910_v38, 0.0  ;;  %v902_v42 = vadd.f32 %v1587_v12, %v901_v39  ;;  %v946_v12 = vsel %vm941_vm3, %v1595_v27, 0 }
 0x29c   : > { %v937_v44 = vpack.c.bf16 %v928_v41, %v927_v40  ;;  %v926_v45 = vmax.f32 %v902_v42, 0.0 }
 0x29e   : > { %v967_v46 = vsel %vm941_vm3, %v937_v44, 0  ;;  %v936_v49 = vpack.c.bf16 %v926_v45, %v925_v47 }
 0x29f   : > { %1260 = vmatpush3.bf16.xpose.msra.mxu1 %v967_v46 }
 0x2a0   : > { %1261 = vmatprep.subr.bf16.mxu1 %v1410_v9  ;;  %v964_v52 = vsel %vm941_vm3, %v936_v49, 0 }
 0x2a7   : > { %1262 = vmatpush3.bf16.xpose.msra.mxu1 %v964_v52 }
 0x2a8   : > { %1263 = vmatprep.subr.bf16.mxu1 %v1410_v9 }
 0x2af   : > { %1264 = vmatpush3.bf16.xpose.msra.mxu1 %v961_v58 }
 0x2b0   : > { %1265 = vmatprep.subr.bf16.mxu1 %v1410_v9 }
 0x2b7   : > { %1266 = vmatpush3.bf16.xpose.msra.mxu1 %v958_v0 }
 0x2b8   : > { %1267 = vmatprep.subr.bf16.mxu1 %v1410_v9 }
 0x2bf   : > { %1268 = vmatpush3.bf16.xpose.msra.mxu1 %v955_v6 }
 0x2c0   : > { %1269 = vmatprep.subr.bf16.mxu1 %v1410_v9 }
 0x2c7   : > { %1270 = vmatpush3.bf16.xpose.msra.mxu1 %v952_v10 }
 0x2c8   : > { %1271 = vmatprep.subr.bf16.mxu1 %v1410_v9 }
 0x2cf   : > { %1272 = vmatpush3.bf16.xpose.msra.mxu1 %v949_v11 }
 0x2d0   : > { %1273 = vmatprep.subr.bf16.mxu1 %v1410_v9 }
 0x2d7   : > { %1274 = vmatpush3.bf16.xpose.msra.mxu1 %v946_v12 }
 0x2de   : > { %1276 = vmatmul.mubr.msk.bf16.vlgmr.msra.gmra.mxu1 %vm941_vm3, %v929_v13 }
 0x39e   : > { %v1003_v15 = vpop.f32.mrf.mxu1 }
 0x39f   : > { %v1004_v16 = vadd.f32 %v1003_v15, %v940_v14 }
 0x3a0   : > { %v1277_v17 = vpop.f32.mrf.mxu1 }
 0x3a1   : > { %v1132_v18 = vmul.f32 -1.442695, %v1004_v16 }
 0x3a2   : > { %v1006_v19 = vpop.f32.mrf.mxu1 }
 0x3a3   : > { %1344 = vpow2.f32 %v1132_v18 }
 0x3a4   : > { %v1278_v9 = vpop.f32.mrf.mxu1 }
 0x3b0   : > { %v1345_v20 = vpop.eup %1344 }
 0x3b1   : > { %v1012_v21 = vadd.f32 1.0, %v1345_v20 }
 0x3b3   : > { %1346 = vrcp.f32 %v1012_v21 }
 0x3c0   : > { %v1347_v22 = vpop.eup %1346 }
 0x3c1   : > { %1015 = vst [vmem:[%s327_s27] sm:$0x1] %v1347_v22 }
 0x3c2   : > { %1361 = shalt.err (!%p1358_p3)
}
 0x3c3   : > { %s1362_s24 = scalar_lea.hbm %s1635_s10, 16  ;;  %s1366_s26 = scalar_lea.hbm %s1679_s9, 32 }
 0x3c4   : > { %p1363_p4 = scmp.ne.s32.totalorder %s1635_s10, %s1362_s24  ;;  %p1367_p9 = scmp.lt.s32.totalorder %s1635_s10, %s1679_s9 }
 0x3c5   : > { %p1368_p10 = scmp.lt.s32.totalorder %s1366_s26, %s1362_s24 }
 0x3c6   : > { %p1364_p7 = pnand %p1363_p4, %p1501_p5 }
 0x3c7   : > { %p1369_p11 = por %p1368_p10, %p1367_p9 }
 0x3c8   : > { %p1365_p8 = pneg %p1364_p7 }
 0x3ca   : > { %p1370_p12 = pnand %p1369_p11, %p1365_p8 }
 0x3cc   : > { %1373 = shalt.err (!%p1370_p12)
}
 0x3cd   : > { %1281 = dma.vmem_to_hbm [thread:$0]  (%p1501_p5), %s1030_s28, 16, %s1635_s10, %s1017_s8  }
 0x3ce PF: > { %p1287_p13 = scmp.ge.s32.totalorder %s1408_s14, 2  ;;  %s1041_s30 = sand.u32 1, %s1396_s11  }
 0x3cf   : > { %s1042_s15 = scalar_lea.sflag [#allocation4], %s1041_s30 }
 0x3d0   : > { %p1284_p0 = pnand %p1287_p13, %p1505_p6 }
 0x3d2   : > { %p1285_p1 = pneg %p1284_p0 }
 0x3d4   : > { %1391 = dma.done.wait (%p1285_p1), %s1042_s15, 16  }
 0x3d5   : > { %1393 = vsyncadd (%p1285_p1), %s1042_s15, 4294967280  ;;  %p21_p2 = scmp.ge.s32.totalorder %s1489_s16, 4   ;;  %s1682_s11 = smov %s1400_s12 }
 0x3d6   : > { %s1683_s12 = smov %s1404_s13  ;;  %s1684_s13 = smov %s1499_s19 }
 0x3d7   : > { %s1685_s14 = smov %s1489_s16  ;;  %23 = sbr.rel (!%p21_p2) target bundleno = 6 (0x6), region = 91 }
 0x3dc   :  { %1046 = vsyncpa [#allocation4], 1 }
 0x3dd   :  { %1048 = vsyncpa [#allocation4 + $0x1], 1 }

</bundles_post_ra>
